<compile_context>
chip_gen: v7x
topology: tpu7x:2x2x1
jax: 0.10.0
libtpu: 0.0.40
codegen_flags: <defaults>
</compile_context>

<pallas_src>
import math

import jax
import jax.numpy as jnp
from jax.experimental import pallas as pl
from jax.experimental.pallas import tpu as pltpu


def _fourier_kernel(x_ref, f_ref, phase_ref, o_ref):
    # x_ref:     [tm, K]   folded input rows (VMEM tile)
    # f_ref:     [K, W]    block-diagonal folded 2*pi*F (resident, tiny)
    # phase_ref: [1, W]    0 on sin lanes, pi/2 on cos lanes (resident)
    # o_ref:     [tm, W]   lane-dense output slab
    x = x_ref[...].astype(jnp.float32)
    f = f_ref[...]
    proj = jnp.dot(x, f, preferred_element_type=jnp.float32)
    # cos(t) = sin(t + pi/2): one sin over a fully-dense vreg covers both halves.
    o_ref[...] = jnp.sin(proj + phase_ref[...]).astype(o_ref.dtype)


def fourier_feature_mapping(x, F, *, tile_m=8192, out_dtype=None):
    """x: [B, N, D], F: [D, mapping_size] -> [B, N, 2*mapping_size]."""
    B, N, D = x.shape
    Din, ms = F.shape
    assert D == Din
    out_dtype = x.dtype if out_dtype is None else out_dtype
    out_w = 2 * ms
    M = B * N

    # ---- pad the feature axis so the output slab is exactly lane-dense ----------
    # out_w is rounded up to the nearest divisor of 128 (next power of two) or, if
    # >128, to the next multiple of 128.  Padded lanes are sliced off afterwards.
    if out_w <= 128:
        out_w_pad = max(2, 1 << (out_w - 1).bit_length())   # next pow2 -> divides 128
        G = 128 // out_w_pad                                 # logical rows per slab row
    else:
        out_w_pad = -(-out_w // 128) * 128
        G = 1
    ms_pad = out_w_pad // 2
    W = G * out_w_pad            # slab width: 128 when folding, else multiple of 128
    K = G * D                    # folded contraction dim
    # NOTE: do NOT grow G/W beyond 128 to "fill" the 256-wide MXU on v6e/v7x: the
    # kron block-diagonal makes MACs per output element grow as G*D while the
    # (tm, 128) writeback slab is already contiguous and full-width.

    # ---- fold 2*pi into F once; zero-pad columns; build block-diag fold ---------
    F2 = (2.0 * math.pi) * F.astype(jnp.float32)                    # [D, ms]
    if ms_pad != ms:
        F2 = jnp.pad(F2, ((0, 0), (0, ms_pad - ms)))                # [D, ms_pad]
    F_cat = jnp.concatenate([F2, F2], axis=1)                       # [D, 2*ms_pad]
    F_big = jnp.kron(jnp.eye(G, dtype=jnp.float32), F_cat)          # [K, W]
    phase_blk = jnp.concatenate(
        [jnp.zeros((ms_pad,), jnp.float32),
         jnp.full((ms_pad,), 0.5 * math.pi, jnp.float32)])
    phase = jnp.tile(phase_blk, G)[None, :]                         # [1, W]

    # ---- fold G logical rows per slab row; pad only when M % G != 0 -------------
    x2d = x.reshape(M, D)
    M_fold = -(-M // G) * G
    if M_fold != M:     # rare corner case; at most G-1 extra rows
        x2d = jnp.pad(x2d, ((0, M_fold - M), (0, 0)))
    Ms = M_fold // G
    x_slab = x2d.reshape(Ms, K)                                     # free row-major view

    # ---- row tile sizing (VMEM-budget aware, lane padding accounted) ------------
    # Per slab row, double-buffered f32: x tile is lane-padded to 128 lanes.
    lanes_x = -(-K // 128) * 128
    bytes_per_row = 2 * 4 * (lanes_x + W)           # double-buffered bytes / slab row
    vmem_tile_budget = 28 * 1024 * 1024             # safe on v7x (64 MiB physical VMEM)
    tm_budget = max(8, (vmem_tile_budget // bytes_per_row) // 8 * 8)
    tm = min(tile_m, tm_budget)
    tm = min(tm, -(-Ms // 8) * 8)                   # never bigger than the problem
    # v7x megacore: ensure >=2 grid steps when each half is still a decent tile,
    # so dimension_semantics=("parallel",) actually feeds both TensorCores.
    half = -(-Ms // 2)
    half = -(-half // 8) * 8
    if half >= 512:
        tm = min(tm, half)
    tm = max(8, (tm // 8) * 8)
    grid_m = pl.cdiv(Ms, tm)
    # The last block may be ragged (Ms % tm != 0): Pallas clamps boundary DMAs, so
    # no pad-to-tile-multiple HBM round trip of x is needed.

    vmem_limit = min(bytes_per_row * tm + 4 * 1024 * 1024, 100 * 1024 * 1024)

    cost = pl.CostEstimate(
        flops=2 * Ms * K * W,
        transcendentals=Ms * W,
        bytes_accessed=(Ms * K * 4 + K * W * 4
                        + Ms * W * jnp.dtype(out_dtype).itemsize),
    )

    out_slab = pl.pallas_call(
        _fourier_kernel,
        out_shape=jax.ShapeDtypeStruct((Ms, W), out_dtype),
        grid_spec=pltpu.PrefetchScalarGridSpec(
            num_scalar_prefetch=0,
            grid=(grid_m,),
            in_specs=[
                pl.BlockSpec((tm, K), lambda i: (i, 0)),
                pl.BlockSpec((K, W), lambda i: (0, 0)),
                pl.BlockSpec((1, W), lambda i: (0, 0)),
            ],
            out_specs=pl.BlockSpec((tm, W), lambda i: (i, 0)),
        ),
        compiler_params=pltpu.CompilerParams(
            dimension_semantics=("parallel",),     # megacore-shards rows on v7x
            vmem_limit_bytes=vmem_limit,
        ),
        cost_estimate=cost,
    )(x_slab, F_big, phase)

    out2d = out_slab.reshape(M_fold, out_w_pad)[:M]   # unfold slab + drop row padding
    if ms_pad != ms:                                  # drop zero-padded sin/cos lanes
        out2d = jnp.concatenate([out2d[:, :ms], out2d[:, ms_pad:ms_pad + ms]], axis=-1)
    return out2d.reshape(B, N, out_w)


def fourier_feature_mapping_ref(x, F):
    proj = 2.0 * math.pi * jnp.matmul(x, F)
    return jnp.concatenate([jnp.sin(proj), jnp.cos(proj)], axis=-1)


if __name__ == "__main__":
    input_dim = 3
    scale = 10.0
    key = jax.random.PRNGKey(0)

    configs = [
        # (B, N, mapping_size, out_dtype, atol)
        (2, 64, 16, None, 2e-3),          # module defaults; M divisible by G
        (2, 100, 16, None, 2e-3),         # ragged slab rows -> clamped boundary block
        (2, 64, 24, None, 2e-3),          # 2*ms=48 -> lane-padded to 64, G=2, post-slice
        (2, 4096, 16, None, 2e-3),        # exercises the 2-step parallel grid path
        (2, 64, 16, jnp.bfloat16, 3e-2),  # bf16 writeback option (v5e/v6e bandwidth win)
    ]
    for B, N, mapping_size, out_dtype, atol in configs:
        key, kx, kf = jax.random.split(key, 3)
        # deterministic equivalent of torch.randn(input_dim, mapping_size) * scale
        F = jax.random.normal(kf, (input_dim, mapping_size), dtype=jnp.float32) * scale
        x = jax.random.normal(kx, (B, N, input_dim), dtype=jnp.float32)

        out = jax.block_until_ready(fourier_feature_mapping(x, F, out_dtype=out_dtype))
        ref = fourier_feature_mapping_ref(x, F)
        assert out.shape == (B, N, 2 * mapping_size), out.shape
        err = float(jnp.max(jnp.abs(out.astype(jnp.float32) - ref)))
        assert err <= atol, (B, N, mapping_size, out_dtype, err)

    print("KERNEL_OK")
</pallas_src>

<mosaic_0001>
module attributes {stable_mosaic.version = 11 : i64} {
  func.func @_fourier_kernel(%arg0: i32, %arg1: memref<32x12xf32, #tpu.memory_space<vmem>>, %arg2: memref<12x128xf32, #tpu.memory_space<vmem>>, %arg3: memref<1x128xf32, #tpu.memory_space<vmem>>, %arg4: memref<32x128xf32, #tpu.memory_space<vmem>>) attributes {dimension_semantics = [#tpu.dimension_semantics<parallel>], iteration_bounds = array<i64: 1>, scalar_prefetch = 0 : i64, scratch_operands = 0 : i64, tpu.core_type = #tpu.core_type<tc>, window_params = [{transform_indices = @transform_0, window_bounds = array<i64: 32, 12>}, {pipeline_mode = #tpu.pipeline_mode<synchronous>, transform_indices = @transform_1, window_bounds = array<i64: 12, 128>}, {pipeline_mode = #tpu.pipeline_mode<synchronous>, transform_indices = @transform_2, window_bounds = array<i64: 1, 128>}, {transform_indices = @transform_3, window_bounds = array<i64: 32, 128>}]} {
    %c0 = arith.constant 0 : index
    %c0_0 = arith.constant 0 : index
    %0 = vector.load %arg1[%c0, %c0_0] : memref<32x12xf32, #tpu.memory_space<vmem>>, vector<32x12xf32>
    %c0_1 = arith.constant 0 : index
    %c0_2 = arith.constant 0 : index
    %1 = vector.load %arg2[%c0_1, %c0_2] : memref<12x128xf32, #tpu.memory_space<vmem>>, vector<12x128xf32>
    %cst = arith.constant dense<0.000000e+00> : vector<32x128xf32>
    %2 = tpu.matmul %0, %1, %cst {dimension_numbers = #tpu.dot_dimension_numbers<[1], [0], [0], [1], [0, 0, 1, 1], [], []>} : vector<32x12xf32>, vector<12x128xf32>, vector<32x128xf32> -> vector<32x128xf32>
    %c0_3 = arith.constant 0 : index
    %c0_4 = arith.constant 0 : index
    %3 = vector.load %arg3[%c0_3, %c0_4] : memref<1x128xf32, #tpu.memory_space<vmem>>, vector<1x128xf32>
    %4 = vector.broadcast %3 : vector<1x128xf32> to vector<32x128xf32>
    %5 = arith.addf %2, %4 : vector<32x128xf32>
    %6 = math.sin %5 : vector<32x128xf32>
    %c0_5 = arith.constant 0 : index
    %c0_6 = arith.constant 0 : index
    %7 = vector.load %arg4[%c0_5, %c0_6] : memref<32x128xf32, #tpu.memory_space<vmem>>, vector<32x128xf32>
    tpu.vector_store %arg4[%c0_5, %c0_6], %6 {strides = array<i32>} : memref<32x128xf32, #tpu.memory_space<vmem>>, vector<32x128xf32>,
    return
  }
  func.func @transform_0(%arg0: i32) -> (i32, i32) {
    %c0_i32 = arith.constant 0 : i32
    %c0_i32_0 = arith.constant 0 : i32
    return %arg0, %c0_i32 : i32, i32
  }
  func.func @transform_1(%arg0: i32) -> (i32, i32) {
    %c0_i32 = arith.constant 0 : i32
    %c0_i32_0 = arith.constant 0 : i32
    %c0_i32_1 = arith.constant 0 : i32
    return %c0_i32, %c0_i32_0 : i32, i32
  }
  func.func @transform_2(%arg0: i32) -> (i32, i32) {
    %c0_i32 = arith.constant 0 : i32
    %c0_i32_0 = arith.constant 0 : i32
    %c0_i32_1 = arith.constant 0 : i32
    return %c0_i32, %c0_i32_0 : i32, i32
  }
  func.func @transform_3(%arg0: i32) -> (i32, i32) {
    %c0_i32 = arith.constant 0 : i32
    %c0_i32_0 = arith.constant 0 : i32
    return %arg0, %c0_i32 : i32, i32
  }
}

</mosaic_0001>

<bundles_post_ra>
// kernel: tpu_custom_call.1
= control target key start
LH: loop header
LB: loop body
LE: loop exit
PB: predicated region body
PF: predicated region fallthrough
CT: control target
= control target key end

     0   :  { %vm41_vm0 = vcmask 1043456   ;;  %vm678_vm1 = vmmov 1   ;;  %vm28_vm3 = vcmask 97280   ;;  %s1037_s0 = inlined_call_operand.vmem [shape: f32[32,12], index: 0, kind: input, shape index: {}]   ;;  %s1038_s1 = inlined_call_operand.vmem [shape: f32[12,128], index: 1, kind: input, shape index: {}]   ;;  %s1039_s2 = inlined_call_operand.vmem [shape: f32[1,128], index: 2, kind: input, shape index: {}]   ;;  %s1040_s3 = inlined_call_operand.hbm [shape: f32[32,128], index: 3, kind: output, shape index: {}]  }
   0x1   :  { %v19_v0 = vld [vmem:[%s1038_s1] sm:$0xff]  ;;  %v20_v1 = vld [vmem:[%s1038_s1 + $0x8] sm:$0xf]  ;;  %vm605_vm2 = vmpackc.low %vm41_vm0, %vm678_vm1 }
   0x2   :  { %v15_v2 = vld [vmem:[%s1037_s0] sm:$0xff]  ;;  %v604_v3 = vpack.c.bf16 %v20_v1, %v19_v0  ;;  %v17_v4 = vld [vmem:[%s1037_s0 + $0x10] sm:$0xff] }
   0x3   :  { %598 = vmatprep.mubr.msk.f32.mxu0 %vm28_vm3, %v15_v2  ;;  %601 = vmatprep.mubr.msk.f32.mxu1 %vm28_vm3, %v17_v4 }
   0x4   :  { %8 = vsyncpa [#allocation3], 0  ;;  %606 = vmatprep.subr.msk.bf16.mxu0 %vm605_vm2, %v604_v3  ;;  %610 = vmatprep.subr.msk.bf16.mxu1 %vm605_vm2, %v604_v3  ;;  %v16_v5 = vld [vmem:[%s1037_s0 + $0x8] sm:$0xff]  ;;  %v18_v6 = vld [vmem:[%s1037_s0 + $0x18] sm:$0xff]  ;;  %v679_v43 = vmov 683565275  }
   0x5   :  { %609 = vmatpush3.bf16.msk.msra.mxu0 %vm605_vm2, %v604_v3  ;;  %611 = vmatpush3.bf16.msk.msra.mxu1 %vm605_vm2, %v604_v3  ;;  %v566_v7 = vld [vmem:[%s1039_s2] ss:$0 sm:$0xff]  ;;  %v680_v47 = vmov 2475754826   ;;  %v681_v49 = vmov 2131351028  }
   0x6   :  { %v682_v51 = vmov 2102212464   ;;  %v683_v53 = vmov 920167782   ;;  %v684_v60 = vmov 1326507024  }
   0x7   :  { %s685_s0 = smov [#allocation2]  }
   0x8   :  { %599 = vmatmul.mubr.msk.f32.vlgmr.msra.gmra.mrb[0].mxu0 %vm28_vm3, %v16_v5  ;;  %602 = vmatmul.mubr.msk.f32.vlgmr.msra.gmra.mrb[0].mxu1 %vm28_vm3, %v18_v6  ;;  %s555_s2 = sshll.u32 %s685_s0, 4  ;;  %s556_s2 = int_to_ptr.vmem [resolvable:$true] %s555_s2 }
   0x9   :  { %s654_s25 = scalar_lea.vmem %s556_s2, 512  ;;  %p659_p1 = scmp.lt.s32.totalorder %s556_s2, %s556_s2 }
   0xa   :  { %p655_p0 = scmp.ne.s32.totalorder %s556_s2, %s654_s25  ;;  %p660_p2 = scmp.lt.s32.totalorder %s654_s25, %s654_s25 }
   0xc   :  { %p661_p3 = por %p660_p2, %p659_p1 }
   0xe   :  { %p662_p4 = pnand %p661_p3, %p655_p0 }
  0xdb   :  { %v600_v8 = vpop.f32.mrb[0].mxu0  ;;  %v603_v9 = vpop.f32.mrb[0].mxu1 }
  0xdc   :  { %v729_v10 = vadd.f32 %v600_v8, %v566_v7  ;;  %v731_v11 = vadd.f32 %v603_v9, %v566_v7  ;;  %v111_v12 = vpop.f32.mrb[1].mxu0  ;;  %v121_v13 = vpop.f32.mrb[1].mxu1 }
  0xdd   :  { %v733_v14 = vadd.f32 %v566_v7, %v111_v12  ;;  %v745_v37 = vadd.f32 %v566_v7, %v121_v13 }
  0xde   :  { %v234_v15 = vand.u32 2147483647, %v729_v10  ;;  %v237_v16 = vand.u32 2139095040, %v729_v10  ;;  %v442_v17 = vand.u32 2147483647, %v731_v11  ;;  %v445_v18 = vand.u32 2139095040, %v731_v11 }
  0xdf   :  { %v133_v23 = vand.u32 2139095040, %v733_v14  ;;  %v130_v31 = vand.u32 2147483647, %v733_v14  ;;  %vm236_vm1 = vcmp.lt.s32.totalorder %v729_v10, 0 }
  0xe0   :  { %v238_v19 = vshrl.u32 %v237_v16, 23  ;;  %v241_v20 = vand.u32 8388607, %v234_v15  ;;  %v446_v21 = vshrl.u32 %v445_v18, 23  ;;  %v449_v22 = vand.u32 8388607, %v442_v17 }
  0xe1   :  { %v134_v26 = vshrl.u32 %v133_v23, 23  ;;  %v753_v40 = vand.u32 8388607, %v130_v31  ;;  %vm858_vm2 = vcmp.le.f32.partialorder %v234_v15, 0.7853982 }
  0xe2   :  { %v576_v24 = vadd.s32 4294967169, %v238_v19  ;;  %v584_v25 = vadd.s32 4294967169, %v446_v21  ;;  %v242_v27 = vor.u32 8388608, %v241_v20  ;;  %v450_v29 = vor.u32 8388608, %v449_v22 }
  0xe3   :  { %v572_v32 = vadd.s32 4294967169, %v134_v26 }
  0xe4   :  { %v244_v28 = vadd.s32 1, %v576_v24  ;;  %v452_v30 = vadd.s32 1, %v584_v25  ;;  %v747_v38 = vshll.u32 %v242_v27, 8  ;;  %v749_v39 = vshll.u32 %v450_v29, 8 }
  0xe5   :  { %v755_v41 = vadd.s32 1, %v572_v32 }
  0xe6   :  { %vm245_vm4 = vcmp.gt.s32.totalorder %v244_v28, 0  ;;  %vm453_vm5 = vcmp.gt.s32.totalorder %v452_v30, 0 }
  0xe7   :  { %v246_v33 = vsel %vm245_vm4, %v244_v28, 0  ;;  %v454_v36 = vsel %vm453_vm5, %v452_v30, 0  ;;  %vm141_vm10 = vcmp.gt.s32.totalorder %v755_v41, 0 }
  0xe8   :  { %v247_v34 = vshrl.u32 %v246_v33, 5  ;;  %v248_v35 = vand.u32 31, %v246_v33  ;;  %v758_v45 = vshrl.u32 %v454_v36, 5  ;;  %v456_v46 = vand.u32 31, %v454_v36 }
  0xea   :  { %v249_v42 = vsub.s32 32, %v248_v35  ;;  %v251_v44 = vshll.u32 %v679_v43, %v248_v35  ;;  %v254_v48 = vshll.u32 %v680_v47, %v248_v35  ;;  %v257_v50 = vshll.u32 %v681_v49, %v248_v35 }
  0xeb   :  { %v260_v52 = vshll.u32 %v682_v51, %v248_v35  ;;  %v263_v54 = vshll.u32 %v683_v53, %v248_v35  ;;  %vm266_vm6 = vcmp.lt.s32.totalorder %v247_v34, 1  ;;  %vm267_vm7 = vcmp.lt.s32.totalorder %v247_v34, 2 }
  0xec   :  { %v252_v55 = vshrl.u32 %v680_v47, %v249_v42  ;;  %v255_v56 = vshrl.u32 %v681_v49, %v249_v42  ;;  %v258_v57 = vshrl.u32 %v682_v51, %v249_v42  ;;  %v250_v58 = vshrl.u32 %v679_v43, %v249_v42 }
  0xed   :  { %v261_v59 = vshrl.u32 %v683_v53, %v249_v42  ;;  %v264_v61 = vshrl.u32 %v684_v60, %v249_v42  ;;  %v457_v1 = vsub.s32 32, %v456_v46  ;;  %vm268_vm8 = vcmp.lt.s32.totalorder %v247_v34, 3 }
  0xee   :  { %v253_v62 = vor.u32 %v252_v55, %v251_v44  ;;  %v256_v63 = vor.u32 %v255_v56, %v254_v48  ;;  %v259_v0 = vor.u32 %v258_v57, %v257_v50  ;;  %vm269_vm9 = vcmp.lt.s32.totalorder %v247_v34, 4 }
  0xef   :  { %v262_v2 = vor.u32 %v261_v59, %v260_v52  ;;  %v265_v3 = vor.u32 %v264_v61, %v263_v54  ;;  %v459_v13 = vshll.u32 %v679_v43, %v456_v46  ;;  %v460_v19 = vshrl.u32 %v680_v47, %v457_v1 }
  0xf0   :  { %v270_v4 = vsel %vm266_vm6, %v250_v58, %v253_v62  ;;  %v271_v5 = vsel %vm269_vm9, %v259_v0, 2102212464  ;;  %v274_v6 = vsel %vm266_vm6, %v253_v62, %v256_v63  ;;  %v278_v7 = vsel %vm266_vm6, %v256_v63, %v259_v0 }
  0xf1   :  { %v272_v8 = vsel %vm268_vm8, %v256_v63, %v271_v5  ;;  %v275_v9 = vsel %vm269_vm9, %v262_v2, 920167782  ;;  %v279_v12 = vsel %vm269_vm9, %v265_v3, 1326507024  ;;  %v462_v20 = vshll.u32 %v680_v47, %v456_v46 }
  0xf2   :  { %v276_v16 = vsel %vm268_vm8, %v259_v0, %v275_v9  ;;  %v280_v18 = vsel %vm268_vm8, %v262_v2, %v279_v12  ;;  %v273_v21 = vsel %vm267_vm7, %v270_v4, %v272_v8  ;;  %v463_v24 = vshrl.u32 %v681_v49, %v457_v1 }
  0xf3   :  { %v277_v22 = vsel %vm267_vm7, %v274_v6, %v276_v16  ;;  %v281_v23 = vsel %vm267_vm7, %v278_v7, %v280_v18  ;;  %v461_v29 = vor.u32 %v460_v19, %v459_v13  ;;  %v465_v32 = vshll.u32 %v681_v49, %v456_v46 }
  0xf4   :  { %v782_v25 = vmul.u32.u64.low %v747_v38, %v281_v23  ;;  %v783_v26 = vmul.u32.u64.high %v747_v38, %v281_v23, %v782_v25  ;;  %v786_v27 = vmul.u32.u64.low %v747_v38, %v277_v22  ;;  %v787_v28 = vmul.u32.u64.high %v747_v38, %v277_v22, %v786_v27 }
  0xf5   :  { %v464_v30 = vor.u32 %v463_v24, %v462_v20  ;;  %v466_v33 = vshrl.u32 %v682_v51, %v457_v1  ;;  %v458_v34 = vshrl.u32 %v679_v43, %v457_v1  ;;  %v468_v35 = vshll.u32 %v682_v51, %v456_v46 }
  0xf6   :  { %v469_v36 = vshrl.u32 %v683_v53, %v457_v1  ;;  %v472_v42 = vshrl.u32 %v684_v60, %v457_v1  ;;  %v289_v44 = vmul.u32 %v747_v38, %v273_v21  ;;  %v471_v50 = vshll.u32 %v683_v53, %v456_v46 }
  0xf7   :  { %v467_v48 = vor.u32 %v466_v33, %v465_v32  ;;  %vm474_vm11 = vcmp.lt.s32.totalorder %v758_v45, 1  ;;  %vm291_vm12 = vc.u32 %v783_v26, %v786_v27  ;;  %v292_v52 = vadd.s32 1, %v787_v28 }
  0xf8   :  { %v470_v54 = vor.u32 %v469_v36, %v468_v35  ;;  %vm475_vm13 = vcmp.lt.s32.totalorder %v758_v45, 2  ;;  %v473_v55 = vor.u32 %v472_v42, %v471_v50  ;;  %vm476_vm14 = vcmp.lt.s32.totalorder %v758_v45, 3 }
  0xf9   :  { %vm477_vm15 = vcmp.lt.s32.totalorder %v758_v45, 4  ;;  %v482_v56 = vsel %vm474_vm11, %v461_v29, %v464_v30  ;;  %v293_v38 = vsel %vm291_vm12, %v292_v52, %v787_v28  ;;  %v486_v58 = vsel %vm474_vm11, %v464_v30, %v467_v48 }
  0xfa   :  { %v479_v57 = vsel %vm477_vm15, %v467_v48, 2102212464  ;;  %v483_v46 = vsel %vm477_vm15, %v470_v54, 920167782  ;;  %v294_v59 = vadd.s32 %v293_v38, %v289_v44  ;;  %v478_v61 = vsel %vm474_vm11, %v458_v34, %v461_v29 }
  0xfb   :  { %v484_v62 = vsel %vm476_vm14, %v467_v48, %v483_v46  ;;  %v487_v63 = vsel %vm477_vm15, %v473_v55, 1326507024  ;;  %v480_v0 = vsel %vm476_vm14, %v464_v30, %v479_v57  ;;  %v142_v3 = vsel %vm141_vm10, %v755_v41, 0 }
  0xfc   :  { %v485_v1 = vsel %vm475_vm13, %v482_v56, %v484_v62  ;;  %v488_v2 = vsel %vm476_vm14, %v470_v54, %v487_v63  ;;  %v295_v4 = vadd.s32 536870912, %v294_v59  ;;  %v481_v13 = vsel %vm475_vm13, %v478_v61, %v480_v0 }
  0xfd   :  { %v489_v5 = vsel %vm475_vm13, %v486_v58, %v488_v2  ;;  %v814_v6 = vmul.u32.u64.low %v749_v39, %v485_v1  ;;  %v815_v7 = vmul.u32.u64.high %v749_v39, %v485_v1, %v814_v6  ;;  %v144_v16 = vand.u32 31, %v142_v3 }
  0xfe   :  { %v819_v8 = vmul.u32.u64.low %v749_v39, %v489_v5  ;;  %v820_v9 = vmul.u32.u64.high %v749_v39, %v489_v5, %v819_v8  ;;  %v296_v12 = vshrl.u32 %v295_v4, 30  ;;  %v138_v41 = vor.u32 8388608, %v753_v40 }
  0xff   :  { %v338_v18 = vand.u32 2147483647, %v745_v37  ;;  %v500_v20 = vadd.s32 1, %v815_v7  ;;  %v145_v21 = vsub.s32 32, %v144_v16  ;;  %v341_v22 = vand.u32 2139095040, %v745_v37 }
 0x100   :  { %v297_v19 = vshll.u32 %v296_v12, 30  ;;  %v497_v23 = vmul.u32 %v749_v39, %v481_v13  ;;  %vm499_vm0 = vc.u32 %v820_v9, %v814_v6  ;;  %v836_v28 = vshll.u32 %v138_v41, 8 }
 0x101   :  { %v501_v45 = vsel %vm499_vm0, %v500_v20, %v815_v7  ;;  %v148_v25 = vshrl.u32 %v680_v47, %v145_v21  ;;  %v840_v29 = vand.u32 8388607, %v338_v18  ;;  %v151_v30 = vshrl.u32 %v681_v49, %v145_v21 }
 0x102   :  { %v831_v24 = vsub.s32 %v294_v59, %v297_v19  ;;  %v502_v40 = vadd.s32 %v501_v45, %v497_v23  ;;  %v154_v32 = vshrl.u32 %v682_v51, %v145_v21  ;;  %v342_v33 = vshrl.u32 %v341_v22, 23 }
 0x103   :  { %v320_v34 = vsub.s32 4, %v296_v12  ;;  %v845_v36 = vshrl.u32 %v142_v3, 5  ;;  %v147_v42 = vshll.u32 %v679_v43, %v144_v16  ;;  %v150_v48 = vshll.u32 %v680_v47, %v144_v16 }
 0x104   :  { %v300_v39 = vsub.s32 0, %v831_v24  ;;  %v503_v35 = vadd.s32 536870912, %v502_v40  ;;  %v153_v50 = vshll.u32 %v681_v49, %v144_v16  ;;  %v157_v52 = vshrl.u32 %v683_v53, %v145_v21 }
 0x105   :  { %v149_v55 = vor.u32 %v148_v25, %v147_v42  ;;  %v156_v56 = vshll.u32 %v682_v51, %v144_v16  ;;  %v160_v38 = vshrl.u32 %v684_v60, %v145_v21  ;;  %v152_v58 = vor.u32 %v151_v30, %v150_v48 }
 0x106   :  { %v577_v44 = vmin.u32 %v300_v39, %v831_v24  ;;  %v852_v54 = vshrl.u32 %v503_v35, 30  ;;  %v155_v59 = vor.u32 %v154_v32, %v153_v50  ;;  %v159_v61 = vshll.u32 %v683_v53, %v144_v16 }
 0x107   :  { %v290_v62 = vadd.s32 %v786_v27, %v783_v26  ;;  %v158_v0 = vor.u32 %v157_v52, %v156_v56  ;;  %v580_v1 = vadd.s32 4294967169, %v342_v33  ;;  %vm162_vm3 = vcmp.lt.s32.totalorder %v845_v36, 1 }
 0x108   :  { %v302_v46 = vclz %v577_v44  ;;  %v505_v63 = vshll.u32 %v852_v54, 30  ;;  %v161_v3 = vor.u32 %v160_v38, %v159_v61  ;;  %vm165_vm4 = vcmp.lt.s32.totalorder %v845_v36, 4 }
 0x109   :  { %vm163_vm5 = vcmp.lt.s32.totalorder %v845_v36, 2  ;;  %vm164_vm6 = vcmp.lt.s32.totalorder %v845_v36, 3  ;;  %v171_v4 = vsel %vm165_vm4, %v158_v0, 920167782  ;;  %v321_v26 = vsel %vm236_vm1, %v320_v34, %v296_v12 }
 0x10a   :  { %v578_v2 = vadd.s32 4294967294, %v302_v46  ;;  %v868_v15 = vsub.s32 %v502_v40, %v505_v63  ;;  %v170_v27 = vsel %vm162_vm3, %v149_v55, %v152_v58  ;;  %v172_v5 = vsel %vm164_vm6, %v155_v59, %v171_v4 }
 0x10b   :  { %v146_v13 = vshrl.u32 %v679_v43, %v145_v21  ;;  %v174_v16 = vsel %vm162_vm3, %v152_v58, %v155_v59  ;;  %v167_v20 = vsel %vm165_vm4, %v155_v59, 2102212464  ;;  %v175_v12 = vsel %vm165_vm4, %v161_v3, 1326507024 }
 0x10c   :  { %vm579_vm7 = vcmp.lt.s32.totalorder %v578_v2, 0  ;;  %v508_v8 = vsub.s32 0, %v868_v15  ;;  %v173_v45 = vsel %vm163_vm5, %v170_v27, %v172_v5  ;;  %v176_v21 = vsel %vm164_vm6, %v158_v0, %v175_v12 }
 0x10d   :  { %v305_v7 = vsel %vm579_vm7, 0, %v578_v2  ;;  %v177_v39 = vsel %vm163_vm5, %v174_v16, %v176_v21  ;;  %v348_v30 = vadd.s32 1, %v580_v1  ;;  %v323_v32 = vsel %vm858_vm2, 0, %v321_v26 }
 0x10e   :  { %v306_v41 = vsub.s32 32, %v305_v7  ;;  %v310_v19 = vsub.s32 4294967266, %v305_v7  ;;  %v307_v22 = vshll.u32 %v831_v24, %v305_v7  ;;  %v585_v23 = vmin.u32 %v508_v8, %v868_v15 }
 0x10f   :  { %v166_v24 = vsel %vm162_vm3, %v146_v13, %v149_v55  ;;  %v168_v34 = vsel %vm164_vm6, %v152_v58, %v167_v20  ;;  %v903_v44 = vmul.u32.u64.low %v836_v28, %v177_v39  ;;  %v904_v48 = vmul.u32.u64.high %v836_v28, %v177_v39, %v903_v44 }
 0x110   :  { %v308_v40 = vshrl.u32 %v290_v62, %v306_v41  ;;  %v311_v25 = vadd.s32 127, %v310_v19  ;;  %v510_v33 = vclz %v585_v23  ;;  %vm349_vm8 = vcmp.gt.s32.totalorder %v348_v30, 0 }
 0x111   :  { %v907_v52 = vmul.u32.u64.low %v836_v28, %v173_v45  ;;  %v908_v56 = vmul.u32.u64.high %v836_v28, %v173_v45, %v907_v52  ;;  %v498_v55 = vadd.s32 %v814_v6, %v820_v9  ;;  %v346_v46 = vor.u32 8388608, %v840_v29 }
 0x112   :  { %v309_v35 = vor.u32 %v308_v40, %v307_v22  ;;  %v312_v42 = vshll.u32 %v311_v25, 23  ;;  %v586_v50 = vadd.s32 4294967294, %v510_v33  ;;  %v350_v58 = vsel %vm349_vm8, %v348_v30, 0 }
 0x113   :  { %v327_v59 = vadd.s32 3, %v323_v32  ;;  %v169_v61 = vsel %vm163_vm5, %v166_v24, %v168_v34  ;;  %v352_v62 = vand.u32 31, %v350_v58  ;;  %vm187_vm10 = vc.u32 %v904_v48, %v907_v52 }
 0x114   :  { %v313_v38 = vor.u32 4788187, %v312_v42  ;;  %vm587_vm9 = vcmp.lt.s32.totalorder %v586_v50, 0  ;;  %v316_v0 = vcvt.s32.f32 %v309_v35  ;;  %v528_v4 = vsub.s32 4, %v852_v54 }
 0x115   :  { %v513_v1 = vsel %vm587_vm9, 0, %v586_v50  ;;  %v188_v6 = vadd.s32 1, %v908_v56  ;;  %v185_v29 = vmul.u32 %v836_v28, %v169_v61  ;;  %v921_v26 = vshrl.u32 %v350_v58, 5 }
 0x116   :  { %v314_v63 = vand.u32 2147483647, %v313_v38  ;;  %v514_v2 = vsub.s32 32, %v513_v1  ;;  %v518_v3 = vsub.s32 4294967266, %v513_v1  ;;  %v353_v36 = vsub.s32 32, %v352_v62 }
 0x117   :  { %v515_v27 = vshll.u32 %v868_v15, %v513_v1  ;;  %v189_v8 = vsel %vm187_vm10, %v188_v6, %v908_v56  ;;  %v355_v41 = vshll.u32 %v679_v43, %v352_v62  ;;  %v358_v22 = vshll.u32 %v680_v47, %v352_v62 }
 0x118   :  { %v317_v9 = vmul.f32 %v316_v0, %v314_v63  ;;  %v516_v5 = vshrl.u32 %v498_v55, %v514_v2  ;;  %v519_v7 = vadd.s32 127, %v518_v3  ;;  %v190_v16 = vadd.s32 %v189_v8, %v185_v29 }
 0x119   :  { %v356_v19 = vshrl.u32 %v680_v47, %v353_v36  ;;  %v359_v28 = vshrl.u32 %v681_v49, %v353_v36  ;;  %v361_v45 = vshll.u32 %v681_v49, %v352_v62  ;;  %v362_v21 = vshrl.u32 %v682_v51, %v353_v36 }
 0x11a   :  { %v318_v13 = vxor.u32 2147483648, %v317_v9  ;;  %v517_v20 = vor.u32 %v516_v5, %v515_v27  ;;  %v520_v12 = vshll.u32 %v519_v7, 23  ;;  %v191_v15 = vadd.s32 536870912, %v190_v16 }
 0x11b   :  { %v357_v39 = vor.u32 %v356_v19, %v355_v41  ;;  %v364_v30 = vshll.u32 %v682_v51, %v352_v62  ;;  %v365_v33 = vshrl.u32 %v683_v53, %v353_v36  ;;  %v360_v34 = vor.u32 %v359_v28, %v358_v22 }
 0x11c   :  { %v319_v23 = vsel %vm236_vm1, %v318_v13, %v317_v9  ;;  %v521_v25 = vor.u32 4788187, %v520_v12  ;;  %v524_v47 = vcvt.s32.f32 %v517_v20  ;;  %v937_v32 = vshrl.u32 %v191_v15, 30 }
 0x11d   :  { %v322_v40 = vsel %vm858_vm2, %v729_v10, %v319_v23  ;;  %v368_v49 = vshrl.u32 %v684_v60, %v353_v36  ;;  %v328_v35 = vand.u32 3, %v327_v59  ;;  %vm444_vm11 = vcmp.lt.s32.totalorder %v731_v11, 0 }
 0x11e   :  { %638 = vcosq.f32 %v322_v40  ;;  %v522_v24 = vand.u32 2147483647, %v521_v25  ;;  %v193_v57 = vshll.u32 %v937_v32, 30  ;;  %v366_v42 = vor.u32 %v365_v33, %v364_v30 }
 0x11f   :  { %640 = vsinq.f32 %v322_v40  ;;  %vm945_vm12 = vcmp.le.f32.partialorder %v442_v17, 0.7853982  ;;  %v363_v50 = vor.u32 %v362_v21, %v361_v45  ;;  %v367_v56 = vshll.u32 %v683_v53, %v352_v62 }
 0x120   :  { %v525_v44 = vmul.f32 %v524_v47, %v522_v24  ;;  %v529_v60 = vsel %vm444_vm11, %v528_v4, %v852_v54  ;;  %v953_v38 = vsub.s32 %v190_v16, %v193_v57  ;;  %vm370_vm13 = vcmp.lt.s32.totalorder %v921_v26, 1 }
 0x121   :  { %v386_v55 = vshll.u32 %v346_v46, 8  ;;  %v369_v59 = vor.u32 %v368_v49, %v367_v56  ;;  %vm373_vm14 = vcmp.lt.s32.totalorder %v921_v26, 4  ;;  %v378_v17 = vsel %vm370_vm13, %v357_v39, %v360_v34 }
 0x122   :  { %v526_v58 = vxor.u32 2147483648, %v525_v44  ;;  %vm329_vm15 = vcmp.lt.s32.totalorder %v328_v35, 2  ;;  %v196_v61 = vsub.s32 0, %v953_v38  ;;  %v354_v53 = vshrl.u32 %v679_v43, %v353_v36 }
 0x123   :  { %vm372_vm0 = vcmp.lt.s32.totalorder %v921_v26, 3  ;;  %v379_v54 = vsel %vm373_vm14, %v366_v42, 920167782  ;;  %vm371_vm1 = vcmp.lt.s32.totalorder %v921_v26, 2  ;;  %v375_v62 = vsel %vm373_vm14, %v363_v50, 2102212464 }
 0x124   :  { %v527_v46 = vsel %vm444_vm11, %v526_v58, %v525_v44  ;;  %v380_v63 = vsel %vm372_vm0, %v363_v50, %v379_v54  ;;  %v573_v0 = vmin.u32 %v196_v61, %v953_v38  ;;  %v382_v2 = vsel %vm370_vm13, %v360_v34, %v363_v50 }
 0x125   :  { %v530_v43 = vsel %vm945_vm12, %v731_v11, %v527_v46  ;;  %v381_v1 = vsel %vm371_vm1, %v378_v17, %v380_v63  ;;  %v383_v3 = vsel %vm373_vm14, %v369_v59, 1326507024  ;;  %vm330_vm2 = vcmp.eq.s32.totalorder %v328_v35, 0 }
 0x126   :  { %642 = vcosq.f32 %v530_v43  ;;  %v981_v4 = vmul.u32.u64.low %v386_v55, %v381_v1  ;;  %v982_v6 = vmul.u32.u64.high %v386_v55, %v381_v1, %v981_v4  ;;  %v531_v29 = vsel %vm945_vm12, 0, %v529_v60 }
 0x127   :  { %644 = vsinq.f32 %v530_v43  ;;  %v198_v36 = vclz %v573_v0  ;;  %v374_v7 = vsel %vm370_vm13, %v354_v53, %v357_v39  ;;  %v376_v8 = vsel %vm372_vm0, %v360_v34, %v375_v62 }
 0x128   :  { %v639_v9 = vpop.eup %638  ;;  %v384_v13 = vsel %vm372_vm0, %v366_v42, %v383_v3  ;;  %vm333_vm3 = vcmp.eq.s32.totalorder %v328_v35, 2  ;;  %v535_v12 = vadd.s32 3, %v531_v29  ;;  %v377_v15 = vsel %vm371_vm1, %v374_v7, %v376_v8 }
 0x129   :  { %v641_v27 = vpop.eup %640  ;;  %v334_v5 = vxor.u32 2147483648, %v639_v9  ;;  %v574_v41 = vadd.s32 4294967294, %v198_v36  ;;  %v385_v19 = vsel %vm371_vm1, %v382_v2, %v384_v13  ;;  %v396_v45 = vadd.s32 1, %v982_v6 }
 0x12a   :  { %v331_v16 = vxor.u32 2147483648, %v641_v27  ;;  %v995_v22 = vmul.u32.u64.low %v386_v55, %v385_v19  ;;  %v996_v28 = vmul.u32.u64.high %v386_v55, %v385_v19, %v995_v22  ;;  %vm326_vm5 = vweird.f32 %v729_v10 }
 0x12b   :  { %v335_v20 = vsel %vm333_vm3, %v334_v5, %v641_v27  ;;  %vm575_vm4 = vcmp.lt.s32.totalorder %v574_v41, 0  ;;  %v186_v39 = vadd.s32 %v907_v52, %v904_v48  ;;  %v536_v33 = vand.u32 3, %v535_v12 }
 0x12c   :  { %v332_v23 = vsel %vm330_vm2, %v639_v9, %v331_v16  ;;  %v201_v40 = vsel %vm575_vm4, 0, %v574_v41  ;;  %v393_v24 = vmul.u32 %v386_v55, %v377_v15  ;;  %vm395_vm6 = vc.u32 %v996_v28, %v981_v4 }
 0x12d   :  { %v336_v21 = vsel %vm329_vm15, %v332_v23, %v335_v20  ;;  %v202_v30 = vsub.s32 32, %v201_v40  ;;  %v206_v47 = vsub.s32 4294967266, %v201_v40  ;;  %v203_v26 = vshll.u32 %v953_v38, %v201_v40 }
 0x12e   :  { %v337_v25 = vsel %vm326_vm5, nan, %v336_v21  ;;  %v397_v10 = vsel %vm395_vm6, %v396_v45, %v982_v6  ;;  %vm541_vm7 = vcmp.eq.s32.totalorder %v536_v33, 2  ;;  %vm538_vm8 = vcmp.eq.s32.totalorder %v536_v33, 0 }
 0x12f   :  { %547 = vst [vmem:[#allocation2 + $0x8] sm:$0xff] %v337_v25  ;;  %v204_v34 = vshrl.u32 %v186_v39, %v202_v30  ;;  %v207_v49 = vadd.s32 127, %v206_v47  ;;  %v398_v57 = vadd.s32 %v397_v10, %v393_v24  ;;  %vm537_vm9 = vcmp.lt.s32.totalorder %v536_v33, 2 }
 0x130   :  { %v643_v35 = vpop.eup %642  ;;  %vm534_vm10 = vweird.f32 %v731_v11  ;;  %v216_v46 = vsub.s32 4, %v937_v32  ;;  %vm132_vm11 = vcmp.lt.s32.totalorder %v733_v14, 0  ;;  %vm131_vm12 = vcmp.le.f32.partialorder %v130_v31, 0.7853982 }
 0x131   :  { %v645_v42 = vpop.eup %644  ;;  %v542_v51 = vxor.u32 2147483648, %v643_v35  ;;  %v205_v44 = vor.u32 %v204_v34, %v203_v26  ;;  %v208_v48 = vshll.u32 %v207_v49, 23  ;;  %v399_v50 = vadd.s32 536870912, %v398_v57 }
 0x132   :  { %v539_v52 = vxor.u32 2147483648, %v645_v42  ;;  %v217_v11 = vsel %vm132_vm11, %v216_v46, %v937_v32  ;;  %v394_v27 = vadd.s32 %v981_v4, %v996_v28  ;;  %vm222_vm1 = vweird.f32 %v733_v14 }
 0x133   :  { %v543_v56 = vsel %vm541_vm7, %v542_v51, %v645_v42  ;;  %v209_v60 = vor.u32 4788187, %v208_v48  ;;  %v400_v58 = vshrl.u32 %v399_v50, 30  ;;  %v212_v17 = vcvt.s32.f32 %v205_v44 }
 0x134   :  { %v540_v55 = vsel %vm538_vm8, %v643_v35, %v539_v52  ;;  %v219_v3 = vsel %vm131_vm12, 0, %v217_v11  ;;  %vm340_vm2 = vcmp.lt.s32.totalorder %v745_v37, 0  ;;  %vm339_vm3 = vcmp.le.f32.partialorder %v338_v18, 0.7853982 }
 0x135   :  { %v544_v38 = vsel %vm537_vm9, %v540_v55, %v543_v56  ;;  %v210_v59 = vand.u32 2147483647, %v209_v60  ;;  %v401_v53 = vshll.u32 %v400_v58, 30  ;;  %v223_v29 = vadd.s32 3, %v219_v3 }
 0x136   :  { %v545_v61 = vsel %vm534_vm10, nan, %v544_v38  ;;  %v424_v39 = vsub.s32 4, %v400_v58  ;;  %vm430_vm7 = vweird.f32 %v745_v37 }
 0x137   :  { %549 = vst [vmem:[#allocation2 + $0x18] sm:$0xff] %v545_v61  ;;  %v213_v54 = vmul.f32 %v212_v17, %v210_v59  ;;  %v402_v62 = vsub.s32 %v398_v57, %v401_v53  ;;  %v224_v31 = vand.u32 3, %v223_v29 }
 0x138   :  { %v425_v33 = vsel %vm340_vm2, %v424_v39, %v400_v58 }
 0x139   :  { %v214_v63 = vxor.u32 2147483648, %v213_v54  ;;  %v404_v43 = vsub.s32 0, %v402_v62  ;;  %vm229_vm14 = vcmp.eq.s32.totalorder %v224_v31, 2  ;;  %vm226_vm15 = vcmp.eq.s32.totalorder %v224_v31, 0 }
 0x13a   :  { %vm225_vm0 = vcmp.lt.s32.totalorder %v224_v31, 2  ;;  %v427_v26 = vsel %vm339_vm3, 0, %v425_v33 }
 0x13b   :  { %v215_v0 = vsel %vm132_vm11, %v214_v63, %v213_v54  ;;  %v581_v2 = vmin.u32 %v404_v43, %v402_v62 }
 0x13c   :  { %v218_v1 = vsel %vm131_vm12, %v733_v14, %v215_v0  ;;  %v431_v14 = vadd.s32 3, %v427_v26 }
 0x13d   :  { %646 = vcosq.f32 %v218_v1  ;;  %v406_v6 = vclz %v581_v2 }
 0x13e   :  { %648 = vsinq.f32 %v218_v1  ;;  %v432_v34 = vand.u32 3, %v431_v14 }
 0x13f   :  { %v582_v9 = vadd.s32 4294967294, %v406_v6 }
 0x140   :  { %vm437_vm4 = vcmp.eq.s32.totalorder %v432_v34, 2  ;;  %vm434_vm5 = vcmp.eq.s32.totalorder %v432_v34, 0  ;;  %vm433_vm6 = vcmp.lt.s32.totalorder %v432_v34, 2 }
 0x141   :  { %vm583_vm13 = vcmp.lt.s32.totalorder %v582_v9, 0 }
 0x142   :  { %v409_v36 = vsel %vm583_vm13, 0, %v582_v9 }
 0x143   :  { %v410_v5 = vsub.s32 32, %v409_v36  ;;  %v414_v7 = vsub.s32 4294967266, %v409_v36  ;;  %v411_v8 = vshll.u32 %v402_v62, %v409_v36 }
 0x145   :  { %v412_v13 = vshrl.u32 %v394_v27, %v410_v5  ;;  %v415_v32 = vadd.s32 127, %v414_v7 }
 0x147   :  { %v647_v16 = vpop.eup %646  ;;  %v413_v20 = vor.u32 %v412_v13, %v411_v8  ;;  %v416_v12 = vshll.u32 %v415_v32, 23 }
 0x148   :  { %v649_v41 = vpop.eup %648  ;;  %v230_v19 = vxor.u32 2147483648, %v647_v16 }
 0x149   :  { %v227_v22 = vxor.u32 2147483648, %v649_v41  ;;  %v417_v15 = vor.u32 4788187, %v416_v12  ;;  %v420_v21 = vcvt.s32.f32 %v413_v20 }
 0x14a   :  { %v231_v23 = vsel %vm229_vm14, %v230_v19, %v649_v41 }
 0x14b   :  { %v228_v45 = vsel %vm226_vm15, %v647_v16, %v227_v22  ;;  %v418_v28 = vand.u32 2147483647, %v417_v15 }
 0x14c   :  { %v232_v4 = vsel %vm225_vm0, %v228_v45, %v231_v23 }
 0x14d   :  { %v233_v40 = vsel %vm222_vm1, nan, %v232_v4  ;;  %v421_v25 = vmul.f32 %v420_v21, %v418_v28 }
 0x14e   :  { %546 = vst [vmem:[#allocation2] sm:$0xff] %v233_v40 }
 0x14f   :  { %v422_v30 = vxor.u32 2147483648, %v421_v25 }
 0x151   :  { %v423_v47 = vsel %vm340_vm2, %v422_v30, %v421_v25 }
 0x152   :  { %v426_v24 = vsel %vm339_vm3, %v745_v37, %v423_v47 }
 0x153   :  { %650 = vcosq.f32 %v426_v24 }
 0x154   :  { %652 = vsinq.f32 %v426_v24 }
 0x15d   :  { %v651_v49 = vpop.eup %650 }
 0x15e   :  { %v653_v10 = vpop.eup %652  ;;  %v438_v35 = vxor.u32 2147483648, %v651_v49 }
 0x15f   :  { %v435_v57 = vxor.u32 2147483648, %v653_v10 }
 0x160   :  { %v439_v42 = vsel %vm437_vm4, %v438_v35, %v653_v10 }
 0x161   :  { %v436_v18 = vsel %vm434_vm5, %v651_v49, %v435_v57 }
 0x162   :  { %v440_v51 = vsel %vm433_vm6, %v436_v18, %v439_v42 }
 0x163   :  { %v441_v44 = vsel %vm430_vm7, nan, %v440_v51 }
 0x164   :  { %548 = vst [vmem:[#allocation2 + $0x10] sm:$0xff] %v441_v44 }
 0x165   :  { %665 = shalt.err (!%p662_p4)
}
 0x166   :  { %s666_s28 = scalar_lea.hbm %s1040_s3, 512 }
 0x167   :  { %p667_p5 = scmp.ne.s32.totalorder %s1040_s3, %s666_s28  ;;  %p670_p6 = scmp.lt.u32.totalorder %s666_s28, %s1040_s3 }
 0x169   :  { %p672_p7 = pnand %p670_p6, %p667_p5 }
 0x16b   :  { %675 = shalt.err (!%p672_p7)
}
 0x16c   :  { %s686_s6 = smov 128   ;;  %s687_s7 = smov 8  }
 0x16d   :  { %561 = dma.vmem_to_hbm [thread:$0]  %s556_s2, 512, %s1040_s3, [#allocation3], %s686_s6, %s686_s6, %s687_s7  }
 0x16e   :  { %676 = dma.done.wait [#allocation3], 512  }
 0x16f   :  { %677 = vsyncadd [#allocation3], 4294966784 }
 0x170   :  { %565 = vsyncpa [#allocation3], 1 }

</bundles_post_ra>
